<compile_context>
chip_gen: v6e
topology: v6e:2x2x1
jax: 0.10.0
libtpu: 0.0.40
codegen_flags: <defaults>
</compile_context>

<pallas_src>
import functools

import jax
import jax.numpy as jnp
from jax import lax
from jax.experimental import pallas as pl
from jax.experimental.pallas import tpu as pltpu


def _ru(x, m):
    return ((x + m - 1) // m) * m


# ----------------------------------------------------------------------------
# Pallas kernel 1: tiled matmul  C = A(bf16) @ B(bf16) + bias(f32), f32 accumulate
# ----------------------------------------------------------------------------
def _mm_kernel(a_ref, b_ref, bias_ref, o_ref, acc_ref):
    k = pl.program_id(2)

    @pl.when(k == 0)
    def _():
        acc_ref[...] = jnp.zeros_like(acc_ref)

    acc_ref[...] += jnp.dot(a_ref[...], b_ref[...],
                            preferred_element_type=jnp.float32)

    @pl.when(k == pl.num_programs(2) - 1)
    def _():
        o_ref[...] = acc_ref[...] + bias_ref[...]


def matmul_bias(a, b, bias):
    """a: (M, K) float32/bf16, b: (K, N) bf16, bias: (N,) f32 -> (M, N) f32."""
    M, K = a.shape
    _, N = b.shape
    tm = 256 if M > 256 else _ru(M, 8)
    tn = 256 if N >= 256 else 128          # 256-wide MXU on v6e/v7x; still fine on v5e
    tk = 512 if K > 512 else _ru(K, 128)
    Mp, Kp, Np = _ru(M, tm), _ru(K, tk), _ru(N, tn)

    a_p = jnp.pad(a.astype(jnp.bfloat16), ((0, Mp - M), (0, Kp - K)))
    b_p = jnp.pad(b.astype(jnp.bfloat16), ((0, Kp - K), (0, Np - N)))
    bias_p = jnp.pad(bias.astype(jnp.float32).reshape(1, N), ((0, 0), (0, Np - N)))

    out = pl.pallas_call(
        _mm_kernel,
        out_shape=jax.ShapeDtypeStruct((Mp, Np), jnp.float32),
        grid_spec=pltpu.PrefetchScalarGridSpec(
            num_scalar_prefetch=0,
            grid=(Mp // tm, Np // tn, Kp // tk),
            in_specs=[
                pl.BlockSpec((tm, tk), lambda i, j, k: (i, k)),
                pl.BlockSpec((tk, tn), lambda i, j, k: (k, j)),
                pl.BlockSpec((1, tn), lambda i, j, k: (0, j)),
            ],
            out_specs=pl.BlockSpec((tm, tn), lambda i, j, k: (i, j)),
            scratch_shapes=[pltpu.VMEM((tm, tn), jnp.float32)],
        ),
        compiler_params=pltpu.CompilerParams(
            dimension_semantics=("parallel", "parallel", "arbitrary")),
    )(a_p, b_p, bias_p)
    return out[:M, :N]


# ----------------------------------------------------------------------------
# Pallas kernel 2: GroupNorm (two-pass variance, eps=1e-5) + LeakyReLU, NHWC
#                  optional fused residual add before the statistics
# ----------------------------------------------------------------------------
def _gn_body(x, w, b, agg, *, inv_n, eps, slope):
    # x: (HW, C) f32; w, b: (1, C); agg: (C, C) block-diagonal group-sum matrix.
    csum = jnp.sum(x, axis=0, keepdims=True)                                # (1, C)
    mean = jnp.dot(csum, agg, preferred_element_type=jnp.float32) * inv_n   # group mean / channel
    d = x - mean
    csq = jnp.sum(d * d, axis=0, keepdims=True)
    var = jnp.dot(csq, agg, preferred_element_type=jnp.float32) * inv_n
    y = d * lax.rsqrt(var + eps) * w + b
    return jnp.where(y > 0, y, slope * y)


def _gn_kernel(x_ref, w_ref, b_ref, agg_ref, o_ref, *, inv_n, eps, slope):
    o_ref[0] = _gn_body(x_ref[0], w_ref[...], b_ref[...], agg_ref[...],
                        inv_n=inv_n, eps=eps, slope=slope)


def _gn_res_kernel(x_ref, r_ref, w_ref, b_ref, agg_ref, o_ref, *, inv_n, eps, slope):
    o_ref[0] = _gn_body(x_ref[0] + r_ref[0], w_ref[...], b_ref[...], agg_ref[...],
                        inv_n=inv_n, eps=eps, slope=slope)


def groupnorm_leaky_nhwc(x, num_groups, weight, bias, residual=None,
                         eps=1e-5, slope=0.01):
    N, H, W, C = x.shape
    HW = H * W
    Cg = C // num_groups
    inv_n = 1.0 / float(Cg * HW)

    x3 = x.reshape(N, HW, C)
    g_ids = jnp.arange(C) // Cg
    agg = (g_ids[:, None] == g_ids[None, :]).astype(jnp.float32)   # (C, C)
    w2 = weight.reshape(1, C).astype(jnp.float32)
    b2 = bias.reshape(1, C).astype(jnp.float32)

    x_spec = pl.BlockSpec((1, HW, C), lambda n: (n, 0, 0))
    vec_spec = pl.BlockSpec((1, C), lambda n: (0, 0))
    agg_spec = pl.BlockSpec((C, C), lambda n: (0, 0))

    if residual is None:
        kern = functools.partial(_gn_kernel, inv_n=inv_n, eps=eps, slope=slope)
        in_specs = [x_spec, vec_spec, vec_spec, agg_spec]
        args = (x3, w2, b2, agg)
    else:
        r3 = residual.reshape(N, HW, C)
        kern = functools.partial(_gn_res_kernel, inv_n=inv_n, eps=eps, slope=slope)
        in_specs = [x_spec, x_spec, vec_spec, vec_spec, agg_spec]
        args = (x3, r3, w2, b2, agg)

    out = pl.pallas_call(
        kern,
        out_shape=jax.ShapeDtypeStruct((N, HW, C), jnp.float32),
        grid=(N,),
        in_specs=in_specs,
        out_specs=x_spec,
        compiler_params=pltpu.CompilerParams(dimension_semantics=("parallel",)),
    )(*args)
    return out.reshape(N, H, W, C)


# ----------------------------------------------------------------------------
# Conv / pooling glue (plain JAX, NHWC) feeding the Pallas matmul
# ----------------------------------------------------------------------------
def _im2col_nhwc(x, kh, kw, stride, pad):
    N, H, W, C = x.shape
    Ho = (H + 2 * pad - kh) // stride + 1
    Wo = (W + 2 * pad - kw) // stride + 1
    xp = jnp.pad(x, ((0, 0), (pad, pad), (pad, pad), (0, 0)))
    cols = []
    for i in range(kh):
        for j in range(kw):
            cols.append(lax.slice(
                xp, (0, i, j, 0),
                (N, i + stride * (Ho - 1) + 1, j + stride * (Wo - 1) + 1, C),
                (1, stride, stride, 1)))
    patches = jnp.concatenate(cols, axis=-1)          # (N, Ho, Wo, kh*kw*C)
    return patches.reshape(N * Ho * Wo, kh * kw * C), Ho, Wo


def conv2d_nhwc(x, wmat, bias, kh, kw, stride, pad):
    """x: (N,H,W,Cin) f32; wmat: (kh*kw*Cin, Cout) bf16; returns (N,Ho,Wo,Cout) f32."""
    N, H, W, C = x.shape
    Cout = wmat.shape[1]
    if kh == 1 and kw == 1 and stride == 1 and pad == 0:
        patches, Ho, Wo = x.reshape(N * H * W, C), H, W
    else:
        patches, Ho, Wo = _im2col_nhwc(x, kh, kw, stride, pad)
    y = matmul_bias(patches, wmat, bias)
    return y.reshape(N, Ho, Wo, Cout)


def avgpool_ceil_nhwc(x, k):
    # AvgPool2d(k, k, ceil_mode=True): edge windows divide by #valid elements.
    N, H, W, C = x.shape
    Ho, Wo = -(-H // k), -(-W // k)
    xp = jnp.pad(x, ((0, 0), (0, Ho * k - H), (0, Wo * k - W), (0, 0)))
    s = xp.reshape(N, Ho, k, Wo, k, C).sum(axis=(2, 4))
    ch = jnp.full((Ho,), float(k)).at[-1].set(float(H - (Ho - 1) * k))
    cw = jnp.full((Wo,), float(k)).at[-1].set(float(W - (Wo - 1) * k))
    return s / (ch[:, None, None] * cw[None, :, None])


# ----------------------------------------------------------------------------
# Parameters (PyTorch-style fan-in uniform; GroupNorm weight=1, bias=0)
# ----------------------------------------------------------------------------
def init_conv(key, cout, cin, kh, kw):
    k1, k2 = jax.random.split(key)
    bound = 1.0 / ((cin * kh * kw) ** 0.5)
    w = jax.random.uniform(k1, (cout, cin, kh, kw), jnp.float32, -bound, bound)
    b = jax.random.uniform(k2, (cout,), jnp.float32, -bound, bound)
    return w, b


def init_gn(c):
    return jnp.ones((c,), jnp.float32), jnp.zeros((c,), jnp.float32)


def init_block_params(key, cin, cout, stride):
    ks = jax.random.split(key, 3)
    p = {'conv1': init_conv(ks[0], cout, cin, 3, 3), 'gn1': init_gn(cout),
         'conv2': init_conv(ks[1], cout, cout, 1, 1), 'gn2': init_gn(cout)}
    if cout != cin:
        p['px'] = init_conv(ks[2], cout, cin, 1, 1)
    return p


def _w_to_mat(w):
    # torch (Cout, Cin, kh, kw) -> (kh*kw*Cin, Cout), cast once to bf16.
    cout, cin, kh, kw = w.shape
    return w.transpose(2, 3, 1, 0).reshape(kh * kw * cin, cout).astype(jnp.bfloat16)


def prepare_block_params(raw):
    prep = {'w1': _w_to_mat(raw['conv1'][0]), 'b1': raw['conv1'][1],
            'g1w': raw['gn1'][0], 'g1b': raw['gn1'][1],
            'w2': _w_to_mat(raw['conv2'][0]), 'b2': raw['conv2'][1],
            'g2w': raw['gn2'][0], 'g2b': raw['gn2'][1]}
    if 'px' in raw:
        prep['wx'] = _w_to_mat(raw['px'][0])
        prep['bx'] = raw['px'][1]
    return prep


# ----------------------------------------------------------------------------
# Block forward (NCHW in / NCHW out, NHWC internally)
# ----------------------------------------------------------------------------
def block_forward(prep, x_nchw, *, cin, cout, stride):
    x = x_nchw.transpose(0, 2, 3, 1)                                  # -> NHWC once
    out = conv2d_nhwc(x, prep['w1'], prep['b1'], 3, 3, stride, 1)     # conv1 3x3
    out = groupnorm_leaky_nhwc(out, cout // 4, prep['g1w'], prep['g1b'])
    out = conv2d_nhwc(out, prep['w2'], prep['b2'], 1, 1, 1, 0)        # conv2 1x1

    sx = x                                                            # process_x shortcut
    if stride > 1:
        sx = avgpool_ceil_nhwc(sx, stride)
    if cout != cin:
        sx = conv2d_nhwc(sx, prep['wx'], prep['bx'], 1, 1, 1, 0)

    out = groupnorm_leaky_nhwc(out, cout // 4, prep['g2w'], prep['g2b'],
                               residual=sx)                           # add + gn2 + leaky fused
    return out.transpose(0, 3, 1, 2)                                  # -> NCHW once


# ----------------------------------------------------------------------------
# Pure-JAX f32 reference (for correctness check)
# ----------------------------------------------------------------------------
def _ref_leaky(x, slope=0.01):
    return jnp.where(x > 0, x, slope * x)


def _ref_gn(x, num_groups, w, b, eps=1e-5):
    N, C, H, W = x.shape
    xg = x.reshape(N, num_groups, -1)
    mean = xg.mean(axis=2, keepdims=True)
    var = ((xg - mean) ** 2).mean(axis=2, keepdims=True)
    xn = ((xg - mean) / jnp.sqrt(var + eps)).reshape(N, C, H, W)
    return xn * w.reshape(1, C, 1, 1) + b.reshape(1, C, 1, 1)


def _ref_conv(x, w, b, stride, pad):
    y = lax.conv_general_dilated(x, w, (stride, stride), ((pad, pad), (pad, pad)),
                                 dimension_numbers=('NCHW', 'OIHW', 'NCHW'))
    return y + b.reshape(1, -1, 1, 1)


def _ref_avgpool_ceil(x, k):
    N, C, H, W = x.shape
    Ho, Wo = -(-H // k), -(-W // k)
    xp = jnp.pad(x, ((0, 0), (0, 0), (0, Ho * k - H), (0, Wo * k - W)))
    s = xp.reshape(N, C, Ho, k, Wo, k).sum(axis=(3, 5))
    ch = jnp.full((Ho,), float(k)).at[-1].set(float(H - (Ho - 1) * k))
    cw = jnp.full((Wo,), float(k)).at[-1].set(float(W - (Wo - 1) * k))
    return s / (ch[:, None] * cw[None, :])


def ref_block(raw, x, cin, cout, stride):
    out = _ref_conv(x, *raw['conv1'], stride, 1)
    out = _ref_leaky(_ref_gn(out, cout // 4, *raw['gn1']))
    out = _ref_conv(out, *raw['conv2'], 1, 0)
    sx = x
    if stride > 1:
        sx = _ref_avgpool_ceil(sx, stride)
    if cout != cin:
        sx = _ref_conv(sx, *raw['px'], 1, 0)
    out = out + sx
    return _ref_leaky(_ref_gn(out, cout // 4, *raw['gn2']))


if __name__ == "__main__":
    cin, cout, stride = 8, 16, 2
    N, H, W = 2, 16, 16

    key = jax.random.PRNGKey(0)
    kp, kx = jax.random.split(key)
    raw = init_block_params(kp, cin, cout, stride)
    prep = prepare_block_params(raw)
    x = jax.random.normal(kx, (N, cin, H, W), jnp.float32)

    fwd = jax.jit(functools.partial(block_forward, cin=cin, cout=cout, stride=stride))
    out = jax.block_until_ready(fwd(prep, x))

    ref = ref_block(raw, x, cin, cout, stride)
    assert out.shape == (N, cout, H // stride, W // stride), out.shape
    assert out.shape == ref.shape
    assert bool(jnp.all(jnp.isfinite(out)))
    err = float(jnp.max(jnp.abs(out - ref)))
    assert err < 0.1, f"max abs err vs f32 reference: {err}"
    print("KERNEL_OK")
</pallas_src>

<mosaic_0001>
module attributes {stable_mosaic.version = 11 : i64} {
  func.func @_mm_kernel(%arg0: i32, %arg1: i32, %arg2: i32, %arg3: memref<128x128xbf16, #tpu.memory_space<vmem>>, %arg4: memref<128x128xbf16, #tpu.memory_space<vmem>>, %arg5: memref<1x128xf32, #tpu.memory_space<vmem>>, %arg6: memref<128x128xf32, #tpu.memory_space<vmem>>, %arg7: memref<128x128xf32, #tpu.memory_space<vmem>>) attributes {dimension_semantics = [#tpu.dimension_semantics<parallel>, #tpu.dimension_semantics<parallel>, #tpu.dimension_semantics<arbitrary>], iteration_bounds = array<i64: 1, 1, 1>, scalar_prefetch = 0 : i64, scratch_operands = 1 : i64, tpu.core_type = #tpu.core_type<tc>, window_params = [{transform_indices = @transform_0, window_bounds = array<i64: 128, 128>}, {transform_indices = @transform_1, window_bounds = array<i64: 128, 128>}, {transform_indices = @transform_2, window_bounds = array<i64: 1, 128>}, {transform_indices = @transform_3, window_bounds = array<i64: 128, 128>}]} {
    %c0_i32 = arith.constant 0 : i32
    %0 = arith.cmpi eq, %arg2, %c0_i32 : i32
    %1 = arith.extui %0 : i1 to i32
    %c0_i32_0 = arith.constant 0 : i32
    %2 = arith.cmpi ne, %1, %c0_i32_0 : i32
    scf.if %2 {
      %cst_10 = arith.constant 0.000000e+00 : f32
      %12 = vector.broadcast %cst_10 : f32 to vector<128x128xf32>
      %c0_11 = arith.constant 0 : index
      %c0_12 = arith.constant 0 : index
      %13 = vector.load %arg7[%c0_11, %c0_12] : memref<128x128xf32, #tpu.memory_space<vmem>>, vector<128x128xf32>
      tpu.vector_store %arg7[%c0_11, %c0_12], %12 {strides = array<i32>} : memref<128x128xf32, #tpu.memory_space<vmem>>, vector<128x128xf32>,
    } else {
    }
    %c0 = arith.constant 0 : index
    %c0_1 = arith.constant 0 : index
    %3 = vector.load %arg7[%c0, %c0_1] : memref<128x128xf32, #tpu.memory_space<vmem>>, vector<128x128xf32>
    %c0_2 = arith.constant 0 : index
    %c0_3 = arith.constant 0 : index
    %4 = vector.load %arg3[%c0_2, %c0_3] : memref<128x128xbf16, #tpu.memory_space<vmem>>, vector<128x128xbf16>
    %c0_4 = arith.constant 0 : index
    %c0_5 = arith.constant 0 : index
    %5 = vector.load %arg4[%c0_4, %c0_5] : memref<128x128xbf16, #tpu.memory_space<vmem>>, vector<128x128xbf16>
    %cst = arith.constant dense<0.000000e+00> : vector<128x128xf32>
    %6 = tpu.matmul %4, %5, %cst {dimension_numbers = #tpu.dot_dimension_numbers<[1], [0], [0], [1], [0, 0, 1, 1], [], []>} : vector<128x128xbf16>, vector<128x128xbf16>, vector<128x128xf32> -> vector<128x128xf32>
    %7 = arith.addf %3, %6 : vector<128x128xf32>
    %c0_6 = arith.constant 0 : index
    %c0_7 = arith.constant 0 : index
    %8 = vector.load %arg7[%c0_6, %c0_7] : memref<128x128xf32, #tpu.memory_space<vmem>>, vector<128x128xf32>
    tpu.vector_store %arg7[%c0_6, %c0_7], %7 {strides = array<i32>} : memref<128x128xf32, #tpu.memory_space<vmem>>, vector<128x128xf32>,
    %c0_i32_8 = arith.constant 0 : i32
    %9 = arith.cmpi eq, %arg2, %c0_i32_8 : i32
    %10 = arith.extui %9 : i1 to i32
    %c0_i32_9 = arith.constant 0 : i32
    %11 = arith.cmpi ne, %10, %c0_i32_9 : i32
    scf.if %11 {
      %c0_10 = arith.constant 0 : index
      %c0_11 = arith.constant 0 : index
      %12 = vector.load %arg7[%c0_10, %c0_11] : memref<128x128xf32, #tpu.memory_space<vmem>>, vector<128x128xf32>
      %c0_12 = arith.constant 0 : index
      %c0_13 = arith.constant 0 : index
      %13 = vector.load %arg5[%c0_12, %c0_13] : memref<1x128xf32, #tpu.memory_space<vmem>>, vector<1x128xf32>
      %14 = vector.broadcast %13 : vector<1x128xf32> to vector<128x128xf32>
      %15 = arith.addf %12, %14 : vector<128x128xf32>
      %c0_14 = arith.constant 0 : index
      %c0_15 = arith.constant 0 : index
      %16 = vector.load %arg6[%c0_14, %c0_15] : memref<128x128xf32, #tpu.memory_space<vmem>>, vector<128x128xf32>
      tpu.vector_store %arg6[%c0_14, %c0_15], %15 {strides = array<i32>} : memref<128x128xf32, #tpu.memory_space<vmem>>, vector<128x128xf32>,
    } else {
    }
    return
  }
  func.func @transform_0(%arg0: i32, %arg1: i32, %arg2: i32) -> (i32, i32) {
    %c0_i32 = arith.constant 0 : i32
    return %arg0, %arg2 : i32, i32
  }
  func.func @transform_1(%arg0: i32, %arg1: i32, %arg2: i32) -> (i32, i32) {
    %c0_i32 = arith.constant 0 : i32
    return %arg2, %arg1 : i32, i32
  }
  func.func @transform_2(%arg0: i32, %arg1: i32, %arg2: i32) -> (i32, i32) {
    %c0_i32 = arith.constant 0 : i32
    %c0_i32_0 = arith.constant 0 : i32
    return %c0_i32, %arg1 : i32, i32
  }
  func.func @transform_3(%arg0: i32, %arg1: i32, %arg2: i32) -> (i32, i32) {
    %c0_i32 = arith.constant 0 : i32
    return %arg0, %arg1 : i32, i32
  }
}

module attributes {stable_mosaic.version = 11 : i64} {
  func.func @_gn_kernel(%arg0: i32, %arg1: memref<1x64x16xf32, #tpu.memory_space<vmem>>, %arg2: memref<1x16xf32, #tpu.memory_space<vmem>>, %arg3: memref<1x16xf32, #tpu.memory_space<vmem>>, %arg4: memref<16x16xf32, #tpu.memory_space<vmem>>, %arg5: memref<1x64x16xf32, #tpu.memory_space<vmem>>) attributes {dimension_semantics = [#tpu.dimension_semantics<parallel>], iteration_bounds = array<i64: 2>, scalar_prefetch = 0 : i64, scratch_operands = 0 : i64, tpu.core_type = #tpu.core_type<tc>, window_params = [{transform_indices = @transform_0, window_bounds = array<i64: 1, 64, 16>}, {pipeline_mode = #tpu.pipeline_mode<synchronous>, transform_indices = @transform_1, window_bounds = array<i64: 1, 16>}, {pipeline_mode = #tpu.pipeline_mode<synchronous>, transform_indices = @transform_2, window_bounds = array<i64: 1, 16>}, {pipeline_mode = #tpu.pipeline_mode<synchronous>, transform_indices = @transform_3, window_bounds = array<i64: 16, 16>}, {transform_indices = @transform_4, window_bounds = array<i64: 1, 64, 16>}]} {
    %c0 = arith.constant 0 : index
    %c0_0 = arith.constant 0 : index
    %c0_1 = arith.constant 0 : index
    %0 = vector.load %arg1[%c0, %c0_0, %c0_1] : memref<1x64x16xf32, #tpu.memory_space<vmem>>, vector<1x64x16xf32>
    %1 = vector.shape_cast %0 : vector<1x64x16xf32> to vector<64x16xf32>
    %c0_2 = arith.constant 0 : index
    %c0_3 = arith.constant 0 : index
    %2 = vector.load %arg2[%c0_2, %c0_3] : memref<1x16xf32, #tpu.memory_space<vmem>>, vector<1x16xf32>
    %c0_4 = arith.constant 0 : index
    %c0_5 = arith.constant 0 : index
    %3 = vector.load %arg3[%c0_4, %c0_5] : memref<1x16xf32, #tpu.memory_space<vmem>>, vector<1x16xf32>
    %c0_6 = arith.constant 0 : index
    %c0_7 = arith.constant 0 : index
    %4 = vector.load %arg4[%c0_6, %c0_7] : memref<16x16xf32, #tpu.memory_space<vmem>>, vector<16x16xf32>
    %cst = arith.constant dense<0.000000e+00> : vector<16xf32>
    %5 = vector.multi_reduction <add>, %1, %cst [0] : vector<64x16xf32> to vector<16xf32>
    %6 = vector.shape_cast %5 : vector<16xf32> to vector<1x16xf32>
    %cst_8 = arith.constant dense<0.000000e+00> : vector<1x16xf32>
    %7 = tpu.matmul %6, %4, %cst_8 {dimension_numbers = #tpu.dot_dimension_numbers<[1], [0], [0], [1], [0, 0, 1, 1], [], []>} : vector<1x16xf32>, vector<16x16xf32>, vector<1x16xf32> -> vector<1x16xf32>
    %cst_9 = arith.constant 3.906250e-03 : f32
    %8 = vector.broadcast %cst_9 : f32 to vector<1x16xf32>
    %9 = arith.mulf %7, %8 : vector<1x16xf32>
    %10 = vector.broadcast %9 : vector<1x16xf32> to vector<64x16xf32>
    %11 = arith.subf %1, %10 : vector<64x16xf32>
    %12 = arith.mulf %11, %11 : vector<64x16xf32>
    %cst_10 = arith.constant dense<0.000000e+00> : vector<16xf32>
    %13 = vector.multi_reduction <add>, %12, %cst_10 [0] : vector<64x16xf32> to vector<16xf32>
    %14 = vector.shape_cast %13 : vector<16xf32> to vector<1x16xf32>
    %cst_11 = arith.constant dense<0.000000e+00> : vector<1x16xf32>
    %15 = tpu.matmul %14, %4, %cst_11 {dimension_numbers = #tpu.dot_dimension_numbers<[1], [0], [0], [1], [0, 0, 1, 1], [], []>} : vector<1x16xf32>, vector<16x16xf32>, vector<1x16xf32> -> vector<1x16xf32>
    %cst_12 = arith.constant 3.906250e-03 : f32
    %16 = vector.broadcast %cst_12 : f32 to vector<1x16xf32>
    %17 = arith.mulf %15, %16 : vector<1x16xf32>
    %cst_13 = arith.constant 9.99999974E-6 : f32
    %18 = vector.broadcast %cst_13 : f32 to vector<1x16xf32>
    %19 = arith.addf %17, %18 : vector<1x16xf32>
    %20 = math.rsqrt %19 : vector<1x16xf32>
    %21 = vector.broadcast %20 : vector<1x16xf32> to vector<64x16xf32>
    %22 = arith.mulf %11, %21 : vector<64x16xf32>
    %23 = vector.broadcast %2 : vector<1x16xf32> to vector<64x16xf32>
    %24 = arith.mulf %22, %23 : vector<64x16xf32>
    %25 = vector.broadcast %3 : vector<1x16xf32> to vector<64x16xf32>
    %26 = arith.addf %24, %25 : vector<64x16xf32>
    %cst_14 = arith.constant 0.000000e+00 : f32
    %27 = vector.broadcast %cst_14 : f32 to vector<64x16xf32>
    %28 = arith.cmpf ogt, %26, %27 : vector<64x16xf32>
    %cst_15 = arith.constant 0.00999999977 : f32
    %29 = vector.broadcast %cst_15 : f32 to vector<64x16xf32>
    %30 = arith.mulf %29, %26 : vector<64x16xf32>
    %31 = arith.select %28, %26, %30 : vector<64x16xi1>, vector<64x16xf32>
    %c0_16 = arith.constant 0 : index
    %c0_17 = arith.constant 0 : index
    %c0_18 = arith.constant 0 : index
    %32 = vector.load %arg5[%c0_16, %c0_17, %c0_18] : memref<1x64x16xf32, #tpu.memory_space<vmem>>, vector<1x64x16xf32>
    %33 = vector.shape_cast %32 : vector<1x64x16xf32> to vector<64x16xf32>
    %34 = vector.shape_cast %31 : vector<64x16xf32> to vector<1x64x16xf32>
    tpu.vector_store %arg5[%c0_16, %c0_17, %c0_18], %34 {strides = array<i32>} : memref<1x64x16xf32, #tpu.memory_space<vmem>>, vector<1x64x16xf32>,
    return
  }
  func.func @transform_0(%arg0: i32) -> (i32, i32, i32) {
    %c0_i32 = arith.constant 0 : i32
    %c0_i32_0 = arith.constant 0 : i32
    %c0_i32_1 = arith.constant 0 : i32
    return %arg0, %c0_i32, %c0_i32_0 : i32, i32, i32
  }
  func.func @transform_1(%arg0: i32) -> (i32, i32) {
    %c0_i32 = arith.constant 0 : i32
    %c0_i32_0 = arith.constant 0 : i32
    %c0_i32_1 = arith.constant 0 : i32
    return %c0_i32, %c0_i32_0 : i32, i32
  }
  func.func @transform_2(%arg0: i32) -> (i32, i32) {
    %c0_i32 = arith.constant 0 : i32
    %c0_i32_0 = arith.constant 0 : i32
    %c0_i32_1 = arith.constant 0 : i32
    return %c0_i32, %c0_i32_0 : i32, i32
  }
  func.func @transform_3(%arg0: i32) -> (i32, i32) {
    %c0_i32 = arith.constant 0 : i32
    %c0_i32_0 = arith.constant 0 : i32
    %c0_i32_1 = arith.constant 0 : i32
    return %c0_i32, %c0_i32_0 : i32, i32
  }
  func.func @transform_4(%arg0: i32) -> (i32, i32, i32) {
    %c0_i32 = arith.constant 0 : i32
    %c0_i32_0 = arith.constant 0 : i32
    %c0_i32_1 = arith.constant 0 : i32
    return %arg0, %c0_i32, %c0_i32_0 : i32, i32, i32
  }
}

module attributes {stable_mosaic.version = 11 : i64} {
  func.func @_gn_res_kernel(%arg0: i32, %arg1: memref<1x64x16xf32, #tpu.memory_space<vmem>>, %arg2: memref<1x64x16xf32, #tpu.memory_space<vmem>>, %arg3: memref<1x16xf32, #tpu.memory_space<vmem>>, %arg4: memref<1x16xf32, #tpu.memory_space<vmem>>, %arg5: memref<16x16xf32, #tpu.memory_space<vmem>>, %arg6: memref<1x64x16xf32, #tpu.memory_space<vmem>>) attributes {dimension_semantics = [#tpu.dimension_semantics<parallel>], iteration_bounds = array<i64: 2>, scalar_prefetch = 0 : i64, scratch_operands = 0 : i64, tpu.core_type = #tpu.core_type<tc>, window_params = [{transform_indices = @transform_0, window_bounds = array<i64: 1, 64, 16>}, {transform_indices = @transform_1, window_bounds = array<i64: 1, 64, 16>}, {pipeline_mode = #tpu.pipeline_mode<synchronous>, transform_indices = @transform_2, window_bounds = array<i64: 1, 16>}, {pipeline_mode = #tpu.pipeline_mode<synchronous>, transform_indices = @transform_3, window_bounds = array<i64: 1, 16>}, {pipeline_mode = #tpu.pipeline_mode<synchronous>, transform_indices = @transform_4, window_bounds = array<i64: 16, 16>}, {transform_indices = @transform_5, window_bounds = array<i64: 1, 64, 16>}]} {
    %c0 = arith.constant 0 : index
    %c0_0 = arith.constant 0 : index
    %c0_1 = arith.constant 0 : index
    %0 = vector.load %arg1[%c0, %c0_0, %c0_1] : memref<1x64x16xf32, #tpu.memory_space<vmem>>, vector<1x64x16xf32>
    %1 = vector.shape_cast %0 : vector<1x64x16xf32> to vector<64x16xf32>
    %c0_2 = arith.constant 0 : index
    %c0_3 = arith.constant 0 : index
    %c0_4 = arith.constant 0 : index
    %2 = vector.load %arg2[%c0_2, %c0_3, %c0_4] : memref<1x64x16xf32, #tpu.memory_space<vmem>>, vector<1x64x16xf32>
    %3 = vector.shape_cast %2 : vector<1x64x16xf32> to vector<64x16xf32>
    %4 = arith.addf %1, %3 : vector<64x16xf32>
    %c0_5 = arith.constant 0 : index
    %c0_6 = arith.constant 0 : index
    %5 = vector.load %arg3[%c0_5, %c0_6] : memref<1x16xf32, #tpu.memory_space<vmem>>, vector<1x16xf32>
    %c0_7 = arith.constant 0 : index
    %c0_8 = arith.constant 0 : index
    %6 = vector.load %arg4[%c0_7, %c0_8] : memref<1x16xf32, #tpu.memory_space<vmem>>, vector<1x16xf32>
    %c0_9 = arith.constant 0 : index
    %c0_10 = arith.constant 0 : index
    %7 = vector.load %arg5[%c0_9, %c0_10] : memref<16x16xf32, #tpu.memory_space<vmem>>, vector<16x16xf32>
    %cst = arith.constant dense<0.000000e+00> : vector<16xf32>
    %8 = vector.multi_reduction <add>, %4, %cst [0] : vector<64x16xf32> to vector<16xf32>
    %9 = vector.shape_cast %8 : vector<16xf32> to vector<1x16xf32>
    %cst_11 = arith.constant dense<0.000000e+00> : vector<1x16xf32>
    %10 = tpu.matmul %9, %7, %cst_11 {dimension_numbers = #tpu.dot_dimension_numbers<[1], [0], [0], [1], [0, 0, 1, 1], [], []>} : vector<1x16xf32>, vector<16x16xf32>, vector<1x16xf32> -> vector<1x16xf32>
    %cst_12 = arith.constant 3.906250e-03 : f32
    %11 = vector.broadcast %cst_12 : f32 to vector<1x16xf32>
    %12 = arith.mulf %10, %11 : vector<1x16xf32>
    %13 = vector.broadcast %12 : vector<1x16xf32> to vector<64x16xf32>
    %14 = arith.subf %4, %13 : vector<64x16xf32>
    %15 = arith.mulf %14, %14 : vector<64x16xf32>
    %cst_13 = arith.constant dense<0.000000e+00> : vector<16xf32>
    %16 = vector.multi_reduction <add>, %15, %cst_13 [0] : vector<64x16xf32> to vector<16xf32>
    %17 = vector.shape_cast %16 : vector<16xf32> to vector<1x16xf32>
    %cst_14 = arith.constant dense<0.000000e+00> : vector<1x16xf32>
    %18 = tpu.matmul %17, %7, %cst_14 {dimension_numbers = #tpu.dot_dimension_numbers<[1], [0], [0], [1], [0, 0, 1, 1], [], []>} : vector<1x16xf32>, vector<16x16xf32>, vector<1x16xf32> -> vector<1x16xf32>
    %cst_15 = arith.constant 3.906250e-03 : f32
    %19 = vector.broadcast %cst_15 : f32 to vector<1x16xf32>
    %20 = arith.mulf %18, %19 : vector<1x16xf32>
    %cst_16 = arith.constant 9.99999974E-6 : f32
    %21 = vector.broadcast %cst_16 : f32 to vector<1x16xf32>
    %22 = arith.addf %20, %21 : vector<1x16xf32>
    %23 = math.rsqrt %22 : vector<1x16xf32>
    %24 = vector.broadcast %23 : vector<1x16xf32> to vector<64x16xf32>
    %25 = arith.mulf %14, %24 : vector<64x16xf32>
    %26 = vector.broadcast %5 : vector<1x16xf32> to vector<64x16xf32>
    %27 = arith.mulf %25, %26 : vector<64x16xf32>
    %28 = vector.broadcast %6 : vector<1x16xf32> to vector<64x16xf32>
    %29 = arith.addf %27, %28 : vector<64x16xf32>
    %cst_17 = arith.constant 0.000000e+00 : f32
    %30 = vector.broadcast %cst_17 : f32 to vector<64x16xf32>
    %31 = arith.cmpf ogt, %29, %30 : vector<64x16xf32>
    %cst_18 = arith.constant 0.00999999977 : f32
    %32 = vector.broadcast %cst_18 : f32 to vector<64x16xf32>
    %33 = arith.mulf %32, %29 : vector<64x16xf32>
    %34 = arith.select %31, %29, %33 : vector<64x16xi1>, vector<64x16xf32>
    %c0_19 = arith.constant 0 : index
    %c0_20 = arith.constant 0 : index
    %c0_21 = arith.constant 0 : index
    %35 = vector.load %arg6[%c0_19, %c0_20, %c0_21] : memref<1x64x16xf32, #tpu.memory_space<vmem>>, vector<1x64x16xf32>
    %36 = vector.shape_cast %35 : vector<1x64x16xf32> to vector<64x16xf32>
    %37 = vector.shape_cast %34 : vector<64x16xf32> to vector<1x64x16xf32>
    tpu.vector_store %arg6[%c0_19, %c0_20, %c0_21], %37 {strides = array<i32>} : memref<1x64x16xf32, #tpu.memory_space<vmem>>, vector<1x64x16xf32>,
    return
  }
  func.func @transform_0(%arg0: i32) -> (i32, i32, i32) {
    %c0_i32 = arith.constant 0 : i32
    %c0_i32_0 = arith.constant 0 : i32
    %c0_i32_1 = arith.constant 0 : i32
    return %arg0, %c0_i32, %c0_i32_0 : i32, i32, i32
  }
  func.func @transform_1(%arg0: i32) -> (i32, i32, i32) {
    %c0_i32 = arith.constant 0 : i32
    %c0_i32_0 = arith.constant 0 : i32
    %c0_i32_1 = arith.constant 0 : i32
    return %arg0, %c0_i32, %c0_i32_0 : i32, i32, i32
  }
  func.func @transform_2(%arg0: i32) -> (i32, i32) {
    %c0_i32 = arith.constant 0 : i32
    %c0_i32_0 = arith.constant 0 : i32
    %c0_i32_1 = arith.constant 0 : i32
    return %c0_i32, %c0_i32_0 : i32, i32
  }
  func.func @transform_3(%arg0: i32) -> (i32, i32) {
    %c0_i32 = arith.constant 0 : i32
    %c0_i32_0 = arith.constant 0 : i32
    %c0_i32_1 = arith.constant 0 : i32
    return %c0_i32, %c0_i32_0 : i32, i32
  }
  func.func @transform_4(%arg0: i32) -> (i32, i32) {
    %c0_i32 = arith.constant 0 : i32
    %c0_i32_0 = arith.constant 0 : i32
    %c0_i32_1 = arith.constant 0 : i32
    return %c0_i32, %c0_i32_0 : i32, i32
  }
  func.func @transform_5(%arg0: i32) -> (i32, i32, i32) {
    %c0_i32 = arith.constant 0 : i32
    %c0_i32_0 = arith.constant 0 : i32
    %c0_i32_1 = arith.constant 0 : i32
    return %arg0, %c0_i32, %c0_i32_0 : i32, i32, i32
  }
}

</mosaic_0001>

<bundles_post_ra>
// kernel: block_forward.8
= control target key start
LH: loop header
LB: loop body
LE: loop exit
PB: predicated region body
PF: predicated region fallthrough
CT: control target
= control target key end

     0   :  { %s586_s1 = inlined_call_operand.vmem [shape: bf16[128,128], index: 1, kind: input, shape index: {}]   ;;  %s587_s0 = inlined_call_operand.vmem [shape: bf16[128,128], index: 0, kind: input, shape index: {}]   ;;  %s588_s2 = inlined_call_operand.vmem [shape: f32[1,128], index: 2, kind: input, shape index: {}]   ;;  %s589_s3 = inlined_call_operand.vmem [shape: f32[128,128], index: 3, kind: output, shape index: {}]  }
   0x1   :  { %v451_v0 = vld [vmem:[%s586_s1 + $0x38] sm:$0xff]   ;;  %v452_v1 = vld [vmem:[%s586_s1 + $0x30] sm:$0xff]   ;;  %v453_v2 = vld [vmem:[%s586_s1 + $0x28] sm:$0xff]  }
   0x2   :  { %403 = vmatprep.subr.bf16.mxu0 %v451_v0  ;;  %435 = vmatprep.subr.bf16.mxu1 %v451_v0  ;;  %v454_v3 = vld [vmem:[%s586_s1 + $0x20] sm:$0xff]   ;;  %v455_v6 = vld [vmem:[%s586_s1 + $0x18] sm:$0xff]   ;;  %v456_v7 = vld [vmem:[%s586_s1 + $0x10] sm:$0xff]  }
   0x3   :  { %404 = vmatpush3.bf16.msra.mxu0 %v451_v0  ;;  %443 = vmatpush3.bf16.msra.mxu1 %v451_v0  ;;  %v459_v4 = vld [vmem:[%s587_s0] sm:$0xff]   ;;  %v457_v8 = vld [vmem:[%s586_s1 + $0x8] sm:$0xff]   ;;  %v463_v12 = vld [vmem:[%s587_s0 + $0x10] sm:$0xff]  }
   0x4   :  { %405 = vmatprep.subr.bf16.mxu0 %v452_v1  ;;  %436 = vmatprep.subr.bf16.mxu1 %v452_v1  ;;  %v460_v5 = vld [vmem:[%s587_s0 + $0x20] sm:$0xff]   ;;  %v461_v10 = vld [vmem:[%s587_s0 + $0x8] sm:$0xff]   ;;  %v464_v13 = vld [vmem:[%s587_s0 + $0x30] sm:$0xff]  }
   0x5   :  { %419 = vmatprep.mubr.bf16.mxu0 %v459_v4  ;;  %427 = vmatprep.mubr.bf16.mxu1 %v460_v5  ;;  %v458_v9 = vld [vmem:[%s586_s1] sm:$0xff]   ;;  %v462_v11 = vld [vmem:[%s587_s0 + $0x28] sm:$0xff]   ;;  %v465_v14 = vld [vmem:[%s587_s0 + $0x18] sm:$0xff]  }
   0x6   :  { %v466_v15 = vld [vmem:[%s587_s0 + $0x38] sm:$0xff]   ;;  %v386_v16 = vld [vmem:[%s588_s2] ss:$0 sm:$0xff] }
   0x7   :  { %406 = vmatpush3.bf16.msra.mxu0 %v452_v1  ;;  %444 = vmatpush3.bf16.msra.mxu1 %v452_v1 }
   0x8   :  { %407 = vmatprep.subr.bf16.mxu0 %v453_v2  ;;  %437 = vmatprep.subr.bf16.mxu1 %v453_v2 }
   0xb   :  { %408 = vmatpush3.bf16.msra.mxu0 %v453_v2  ;;  %445 = vmatpush3.bf16.msra.mxu1 %v453_v2 }
   0xc   :  { %409 = vmatprep.subr.bf16.mxu0 %v454_v3  ;;  %438 = vmatprep.subr.bf16.mxu1 %v454_v3 }
   0xf   :  { %410 = vmatpush3.bf16.msra.mxu0 %v454_v3  ;;  %446 = vmatpush3.bf16.msra.mxu1 %v454_v3 }
  0x10   :  { %411 = vmatprep.subr.bf16.mxu0 %v455_v6  ;;  %439 = vmatprep.subr.bf16.mxu1 %v455_v6 }
  0x13   :  { %412 = vmatpush3.bf16.msra.mxu0 %v455_v6  ;;  %447 = vmatpush3.bf16.msra.mxu1 %v455_v6 }
  0x14   :  { %413 = vmatprep.subr.bf16.mxu0 %v456_v7  ;;  %440 = vmatprep.subr.bf16.mxu1 %v456_v7 }
  0x17   :  { %414 = vmatpush3.bf16.msra.mxu0 %v456_v7  ;;  %448 = vmatpush3.bf16.msra.mxu1 %v456_v7 }
  0x18   :  { %415 = vmatprep.subr.bf16.mxu0 %v457_v8  ;;  %441 = vmatprep.subr.bf16.mxu1 %v457_v8 }
  0x1b   :  { %416 = vmatpush3.bf16.msra.mxu0 %v457_v8  ;;  %449 = vmatpush3.bf16.msra.mxu1 %v457_v8 }
  0x1c   :  { %417 = vmatprep.subr.bf16.mxu0 %v458_v9  ;;  %442 = vmatprep.subr.bf16.mxu1 %v458_v9 }
  0x1f   :  { %418 = vmatpush3.bf16.msra.mxu0 %v458_v9  ;;  %450 = vmatpush3.bf16.msra.mxu1 %v458_v9 }
  0x22   :  { %420 = vmatmul.mubr.bf16.vlgmr.msra.gmra.mxu0 %v461_v10  ;;  %428 = vmatmul.mubr.bf16.vlgmr.msra.gmra.mxu1 %v462_v11 }
  0x23   :  { %423 = vmatprep.mubr.bf16.mxu0 %v463_v12  ;;  %431 = vmatprep.mubr.bf16.mxu1 %v464_v13 }
  0x2a   :  { %424 = vmatmul.mubr.bf16.gmra.mxu0 %v465_v14  ;;  %432 = vmatmul.mubr.bf16.gmra.mxu1 %v466_v15 }
  0xe2   :  { %v421_v17 = vpop.f32.mrf.mxu0  ;;  %v429_v18 = vpop.f32.mrf.mxu1 }
  0xe3   :  { %v336_v19 = vadd.f32 %v421_v17, %v386_v16  ;;  %v344_v20 = vadd.f32 %v429_v18, %v386_v16 }
  0xe4   :  { %v213_v21 = vpop.f32.mrf.mxu0  ;;  %v245_v22 = vpop.f32.mrf.mxu1 }
  0xe5   :  { %352 = vst [vmem:[%s589_s3 + $0x10] sm:$0xff] %v336_v19  ;;  %360 = vst [vmem:[%s589_s3 + $0x50] sm:$0xff] %v344_v20  ;;  %v334_v23 = vadd.f32 %v386_v16, %v213_v21  ;;  %v342_v24 = vadd.f32 %v386_v16, %v245_v22 }
  0xe6   :  { %v422_v25 = vpop.f32.mrf.mxu0  ;;  %v430_v26 = vpop.f32.mrf.mxu1 }
  0xe7   :  { %350 = vst [vmem:[%s589_s3] sm:$0xff] %v334_v23  ;;  %358 = vst [vmem:[%s589_s3 + $0x40] sm:$0xff] %v342_v24  ;;  %v337_v27 = vadd.f32 %v422_v25, %v386_v16  ;;  %v345_v28 = vadd.f32 %v430_v26, %v386_v16 }
  0xe8   :  { %v216_v29 = vpop.f32.mrf.mxu0  ;;  %v248_v30 = vpop.f32.mrf.mxu1 }
  0xe9   :  { %353 = vst [vmem:[%s589_s3 + $0x18] sm:$0xff] %v337_v27  ;;  %361 = vst [vmem:[%s589_s3 + $0x58] sm:$0xff] %v345_v28  ;;  %v335_v31 = vadd.f32 %v386_v16, %v216_v29  ;;  %v343_v32 = vadd.f32 %v386_v16, %v248_v30 }
  0xea   :  { %v425_v33 = vpop.f32.mrf.mxu0  ;;  %v433_v34 = vpop.f32.mrf.mxu1 }
  0xeb   :  { %351 = vst [vmem:[%s589_s3 + $0x8] sm:$0xff] %v335_v31  ;;  %359 = vst [vmem:[%s589_s3 + $0x48] sm:$0xff] %v343_v32  ;;  %v340_v35 = vadd.f32 %v425_v33, %v386_v16  ;;  %v348_v36 = vadd.f32 %v433_v34, %v386_v16 }
  0xec   :  { %v229_v37 = vpop.f32.mrf.mxu0  ;;  %v261_v38 = vpop.f32.mrf.mxu1 }
  0xed   :  { %356 = vst [vmem:[%s589_s3 + $0x30] sm:$0xff] %v340_v35  ;;  %364 = vst [vmem:[%s589_s3 + $0x70] sm:$0xff] %v348_v36  ;;  %v338_v39 = vadd.f32 %v386_v16, %v229_v37  ;;  %v346_v40 = vadd.f32 %v386_v16, %v261_v38 }
  0xee   :  { %v426_v41 = vpop.f32.mrf.mxu0  ;;  %v434_v42 = vpop.f32.mrf.mxu1 }
  0xef   :  { %354 = vst [vmem:[%s589_s3 + $0x20] sm:$0xff] %v338_v39  ;;  %362 = vst [vmem:[%s589_s3 + $0x60] sm:$0xff] %v346_v40  ;;  %v341_v43 = vadd.f32 %v426_v41, %v386_v16  ;;  %v349_v44 = vadd.f32 %v434_v42, %v386_v16 }
  0xf0   :  { %v232_v45 = vpop.f32.mrf.mxu0  ;;  %v264_v46 = vpop.f32.mrf.mxu1 }
  0xf1   :  { %357 = vst [vmem:[%s589_s3 + $0x38] sm:$0xff] %v341_v43  ;;  %365 = vst [vmem:[%s589_s3 + $0x78] sm:$0xff] %v349_v44  ;;  %v339_v47 = vadd.f32 %v386_v16, %v232_v45  ;;  %v347_v48 = vadd.f32 %v386_v16, %v264_v46 }
  0xf3   :  { %355 = vst [vmem:[%s589_s3 + $0x28] sm:$0xff] %v339_v47  ;;  %363 = vst [vmem:[%s589_s3 + $0x68] sm:$0xff] %v347_v48 }

// kernel: block_forward.6
= control target key start
LH: loop header
LB: loop body
LE: loop exit
PB: predicated region body
PF: predicated region fallthrough
CT: control target
= control target key end

     0   :  { %s634_s15 = smov 0   ;;  %s704_s0 = inlined_call_operand.vmem [shape: f32[2,64,16], index: 0, kind: input, shape index: {}]   ;;  %s705_s1 = inlined_call_operand.vmem [shape: f32[1,16], index: 1, kind: input, shape index: {}]   ;;  %s706_s2 = inlined_call_operand.vmem [shape: f32[1,16], index: 2, kind: input, shape index: {}]   ;;  %s707_s3 = inlined_call_operand.vmem [shape: f32[16,16], index: 3, kind: input, shape index: {}]   ;;  %s708_s4 = inlined_call_operand.vmem [shape: f32[2,64,16], index: 4, kind: output, shape index: {}]  }
   0x1 LB: > { %s550_s16 = sadd.s32 4294967295, %s605_s15   ;;  %p554_p0 = scmp.ge.s32.totalorder %s605_s15, 1  ;;  %s605_s15 = sphi %s634_s15, %s14_s15  }
   0x2   : > { %p162_p1 = scmp.lt.s32.totalorder %s605_s15, 3 }
   0x4   : > { %p163_p2 = pnand %p554_p0, %p162_p1 }
   0x5   : > { %p188_p3 = scmp.lt.s32.totalorder (!%p163_p2), %s550_s16, 1 }
   0x6   : > { %166 = sbr.rel (%p163_p2) target bundleno = 499 (0x1f3), region = 36 }
   0xb   : > { %v209_v0 = vld [vmem:[%s707_s3 + $0x8] sm:$0xff]  ;;  %v607_v1 = vmov 0.0   ;;  %v208_v2 = vld [vmem:[%s707_s3] sm:$0xff]  ;;  %vm608_vm0 = vmmov 0   ;;  %s710_s16 = smov (!%p188_p3, %s550_s16), 1  ;;  %vm210_vm1 = vcmask 130048   ;;  %v306_v32 = vlaneseq }
   0xc   : > { %573 = vmatprep.subr.mxu0 %v607_v1  ;;  %577 = vmatprep.mubr.msk.f32.mxu0 %vm608_vm0, %v607_v1  ;;  %s565_s21 = sshll.u32 %s710_s16, 6 }
   0xd   : > { %574 = vmatpush3.msra.mxu0 %v209_v0  ;;  %580 = vmatprep.subr.mxu1 %v607_v1  ;;  %s192_s24 = scalar_lea.vmem %s704_s0, %s565_s21  ;;  %v307_v33 = vshrl.u32 %v306_v32, 7  ;;  %s197_s5 = scalar_lea.vmem %s708_s4, %s565_s21 }
   0xe   : > { %575 = vmatprep.subr.mxu0 %v607_v1  ;;  %581 = vmatpush3.msra.mxu1 %v209_v0  ;;  %v198_v3 = vld [vmem:[%s192_s24] sm:$0xff]  ;;  %v199_v4 = vld [vmem:[%s192_s24 + $0x8] sm:$0xff]  ;;  %v200_v5 = vld [vmem:[%s192_s24 + $0x10] sm:$0xff] }
   0xf   : > { %576 = vmatpush3.msra.mxu0 %v208_v2  ;;  %582 = vmatprep.subr.mxu1 %v607_v1  ;;  %v201_v6 = vld [vmem:[%s192_s24 + $0x18] sm:$0xff]  ;;  %v211_v7 = vsel %vm210_vm1, %v198_v3, 0.0  ;;  %v212_v8 = vsel %vm210_vm1, %v199_v4, 0.0  ;;  %v214_v9 = vsel %vm210_vm1, %v200_v5, 0.0  ;;  %v202_v10 = vld [vmem:[%s192_s24 + $0x20] sm:$0xff]  ;;  %v203_v13 = vld [vmem:[%s192_s24 + $0x28] sm:$0xff] }
  0x10   : > { %583 = vmatpush3.msra.mxu1 %v208_v2  ;;  %584 = vmatprep.mubr.msk.f32.mxu1 %vm608_vm0, %v607_v1  ;;  %v213_v11 = vadd.f32 %v212_v8, %v211_v7  ;;  %v216_v12 = vsel %vm210_vm1, %v201_v6, 0.0  ;;  %v218_v15 = vsel %vm210_vm1, %v202_v10, 0.0  ;;  %v204_v16 = vld [vmem:[%s192_s24 + $0x30] sm:$0xff]  ;;  %v220_v18 = vsel %vm210_vm1, %v203_v13, 0.0  ;;  %v205_v19 = vld [vmem:[%s192_s24 + $0x38] sm:$0xff] }
  0x11   : > { %v222_v21 = vsel %vm210_vm1, %v204_v16, 0.0  ;;  %v224_v23 = vsel %vm210_vm1, %v205_v19, 0.0  ;;  %v308_v34 = vsub.s32 0, %v307_v33 }
  0x12   : > { %v215_v14 = vadd.f32 %v214_v9, %v213_v11 }
  0x14   : > { %v217_v17 = vadd.f32 %v216_v12, %v215_v14 }
  0x16   : > { %v219_v20 = vadd.f32 %v218_v15, %v217_v17 }
  0x18   : > { %v221_v22 = vadd.f32 %v220_v18, %v219_v20  ;;  %v561_v18 = vld [vmem:[%s705_s1] ss:$0 sm:$0xff] }
  0x1a   : > { %v223_v24 = vadd.f32 %v222_v21, %v221_v22 }
  0x1c   : > { %v225_v25 = vadd.f32 %v224_v23, %v223_v24  ;;  %v562_v23 = vld [vmem:[%s706_s2] ss:$0 sm:$0xff] }
  0x1e   : > { %v226_v26 = vrot.slane %v225_v25, 4 }
  0x20   : > { %v227_v27 = vadd.f32 %v226_v26, %v225_v25 }
  0x22   : > { %v228_v28 = vrot.slane %v227_v27, 2 }
  0x24   : > { %v229_v29 = vadd.f32 %v228_v28, %v227_v27 }
  0x26   : > { %v230_v30 = vrot.slane %v229_v29, 1 }
  0x28   : > { %v231_v31 = vadd.f32 %v230_v30, %v229_v29 }
  0x2a   : > { %578 = vmatmul.mubr.msk.f32.vlgmr.msra.gmra.mxu0 %vm210_vm1, %v231_v31 }
  0xea   : > { %v301_v35 = vpop.f32.mrf.mxu0 }
  0xeb   : > { %v305_v36 = vmul.f32 0.00390625, %v301_v35 }
  0xec   : > { %v579_v37 = vpop.f32.mrf.mxu0 }
  0xed   : > { %v309_v38 = vrot.slane %v305_v36, %v308_v34 }
  0xef   : > { %v310_v39 = vsub.f32 %v198_v3, %v309_v38  ;;  %v311_v40 = vsub.f32 %v199_v4, %v309_v38  ;;  %v312_v41 = vsub.f32 %v200_v5, %v309_v38  ;;  %v313_v42 = vsub.f32 %v201_v6, %v309_v38 }
  0xf0   : > { %v314_v43 = vsub.f32 %v202_v10, %v309_v38  ;;  %v315_v47 = vsub.f32 %v203_v13, %v309_v38  ;;  %v316_v52 = vsub.f32 %v204_v16, %v309_v38  ;;  %v317_v56 = vsub.f32 %v205_v19, %v309_v38 }
  0xf1   : > { %v318_v44 = vmul.f32 %v310_v39, %v310_v39  ;;  %v319_v45 = vmul.f32 %v311_v40, %v311_v40  ;;  %v320_v46 = vmul.f32 %v312_v41, %v312_v41  ;;  %v321_v48 = vmul.f32 %v313_v42, %v313_v42 }
  0xf2   : > { %v322_v53 = vmul.f32 %v314_v43, %v314_v43  ;;  %v323_v57 = vmul.f32 %v315_v47, %v315_v47  ;;  %v324_v60 = vmul.f32 %v316_v52, %v316_v52  ;;  %v325_v63 = vmul.f32 %v317_v56, %v317_v56 }
  0xf3   : > { %v326_v49 = vsel %vm210_vm1, %v318_v44, 0.0  ;;  %v327_v50 = vsel %vm210_vm1, %v319_v45, 0.0  ;;  %v329_v54 = vsel %vm210_vm1, %v320_v46, 0.0  ;;  %v331_v58 = vsel %vm210_vm1, %v321_v48, 0.0 }
  0xf4   : > { %v328_v51 = vadd.f32 %v327_v50, %v326_v49  ;;  %v333_v61 = vsel %vm210_vm1, %v322_v53, 0.0  ;;  %v335_v0 = vsel %vm210_vm1, %v323_v57, 0.0  ;;  %v337_v2 = vsel %vm210_vm1, %v324_v60, 0.0 }
  0xf5   : > { %v339_v4 = vsel %vm210_vm1, %v325_v63, 0.0 }
  0xf6   : > { %v330_v55 = vadd.f32 %v329_v54, %v328_v51 }
  0xf8   : > { %v332_v59 = vadd.f32 %v331_v58, %v330_v55 }
  0xfa   : > { %v334_v62 = vadd.f32 %v333_v61, %v332_v59 }
  0xfc   : > { %v336_v1 = vadd.f32 %v335_v0, %v334_v62 }
  0xfe   : > { %v338_v3 = vadd.f32 %v337_v2, %v336_v1 }
 0x100   : > { %v340_v5 = vadd.f32 %v339_v4, %v338_v3 }
 0x102   : > { %v341_v6 = vrot.slane %v340_v5, 4 }
 0x104   : > { %v342_v7 = vadd.f32 %v341_v6, %v340_v5 }
 0x106   : > { %v343_v8 = vrot.slane %v342_v7, 2 }
 0x108   : > { %v344_v9 = vadd.f32 %v343_v8, %v342_v7 }
 0x10a   : > { %v345_v10 = vrot.slane %v344_v9, 1 }
 0x10c   : > { %v346_v11 = vadd.f32 %v345_v10, %v344_v9 }
 0x10e   : > { %585 = vmatmul.mubr.msk.f32.vlgmr.msra.gmra.mxu1 %vm210_vm1, %v346_v11 }
 0x1ce   : > { %v416_v12 = vpop.f32.mrf.mxu1 }
 0x1cf   : > { %v420_v13 = vmul.f32 0.00390625, %v416_v12 }
 0x1d0   : > { %v586_v14 = vpop.f32.mrf.mxu1 }
 0x1d1   : > { %v421_v15 = vadd.f32 1e-05, %v420_v13 }
 0x1d3   : > { %597 = vrsqrt.f32 %v421_v15 }
 0x1e0   : > { %v598_v16 = vpop.eup %597 }
 0x1e1   : > { %v426_v17 = vrot.slane %v598_v16, %v308_v34 }
 0x1e3   : > { %v427_v19 = vmul.f32 %v426_v17, %v310_v39  ;;  %v428_v20 = vmul.f32 %v426_v17, %v311_v40  ;;  %v429_v21 = vmul.f32 %v426_v17, %v312_v41  ;;  %v430_v22 = vmul.f32 %v426_v17, %v313_v42 }
 0x1e4   : > { %v431_v24 = vmul.f32 %v426_v17, %v314_v43  ;;  %v432_v25 = vmul.f32 %v426_v17, %v315_v47  ;;  %v433_v26 = vmul.f32 %v426_v17, %v316_v52  ;;  %v434_v27 = vmul.f32 %v426_v17, %v317_v56 }
 0x1e5   : > { %v441_v28 = vmul.f32 %v561_v18, %v427_v19  ;;  %v442_v29 = vmul.f32 %v561_v18, %v428_v20  ;;  %v443_v30 = vmul.f32 %v561_v18, %v429_v21  ;;  %v444_v31 = vmul.f32 %v561_v18, %v430_v22 }
 0x1e6   : > { %v445_v32 = vmul.f32 %v561_v18, %v431_v24  ;;  %v446_v33 = vmul.f32 %v561_v18, %v432_v25  ;;  %v447_v34 = vmul.f32 %v561_v18, %v433_v26  ;;  %v448_v35 = vmul.f32 %v561_v18, %v434_v27 }
 0x1e7   : > { %v455_v36 = vadd.f32 %v562_v23, %v441_v28  ;;  %v456_v37 = vadd.f32 %v562_v23, %v442_v29  ;;  %v457_v38 = vadd.f32 %v562_v23, %v443_v30  ;;  %v458_v39 = vadd.f32 %v562_v23, %v444_v31 }
 0x1e8   : > { %v459_v40 = vadd.f32 %v562_v23, %v445_v32  ;;  %v460_v41 = vadd.f32 %v562_v23, %v446_v33  ;;  %v461_v42 = vadd.f32 %v562_v23, %v447_v34  ;;  %v462_v43 = vadd.f32 %v562_v23, %v448_v35 }
 0x1e9   : > { %vm463_vm2 = vcmp.gt.f32.partialorder %v455_v36, 0.0  ;;  %vm464_vm3 = vcmp.gt.f32.partialorder %v456_v37, 0.0  ;;  %vm465_vm4 = vcmp.gt.f32.partialorder %v457_v38, 0.0  ;;  %vm466_vm5 = vcmp.gt.f32.partialorder %v458_v39, 0.0 }
 0x1ea   : > { %vm467_vm6 = vcmp.gt.f32.partialorder %v459_v40, 0.0  ;;  %vm468_vm7 = vcmp.gt.f32.partialorder %v460_v41, 0.0  ;;  %vm469_vm8 = vcmp.gt.f32.partialorder %v461_v42, 0.0  ;;  %vm470_vm9 = vcmp.gt.f32.partialorder %v462_v43, 0.0 }
 0x1eb   : > { %v471_v44 = vmul.f32 0.01, %v455_v36  ;;  %v472_v45 = vmul.f32 0.01, %v456_v37  ;;  %v473_v46 = vmul.f32 0.01, %v457_v38 }
 0x1ec   : > { %v474_v47 = vmul.f32 0.01, %v458_v39  ;;  %v475_v48 = vmul.f32 0.01, %v459_v40  ;;  %v476_v49 = vmul.f32 0.01, %v460_v41 }
 0x1ed   : > { %v477_v50 = vmul.f32 0.01, %v461_v42  ;;  %v478_v51 = vmul.f32 0.01, %v462_v43  ;;  %v479_v52 = vsel %vm463_vm2, %v455_v36, %v471_v44  ;;  %v480_v53 = vsel %vm464_vm3, %v456_v37, %v472_v45 }
 0x1ee   : > { %v481_v54 = vsel %vm465_vm4, %v457_v38, %v473_v46  ;;  %v482_v55 = vsel %vm466_vm5, %v458_v39, %v474_v47  ;;  %v483_v56 = vsel %vm467_vm6, %v459_v40, %v475_v48  ;;  %v484_v57 = vsel %vm468_vm7, %v460_v41, %v476_v49  ;;  %487 = vst.msk [vmem:[%s197_s5] sm:$0xff] %vm210_vm1, %v479_v52 }
 0x1ef   : > { %488 = vst.msk [vmem:[%s197_s5 + $0x8] sm:$0xff] %vm210_vm1, %v480_v53  ;;  %v485_v58 = vsel %vm469_vm8, %v461_v42, %v477_v50  ;;  %v486_v59 = vsel %vm470_vm9, %v462_v43, %v478_v51  ;;  %489 = vst.msk [vmem:[%s197_s5 + $0x10] sm:$0xff] %vm210_vm1, %v481_v54 }
 0x1f0   : > { %490 = vst.msk [vmem:[%s197_s5 + $0x18] sm:$0xff] %vm210_vm1, %v482_v55  ;;  %491 = vst.msk [vmem:[%s197_s5 + $0x20] sm:$0xff] %vm210_vm1, %v483_v56 }
 0x1f1   : > { %492 = vst.msk [vmem:[%s197_s5 + $0x28] sm:$0xff] %vm210_vm1, %v484_v57  ;;  %493 = vst.msk [vmem:[%s197_s5 + $0x30] sm:$0xff] %vm210_vm1, %v485_v58 }
 0x1f2   : > { %494 = vst.msk [vmem:[%s197_s5 + $0x38] sm:$0xff] %vm210_vm1, %v486_v59 }
 0x1f3 PF: > { %s14_s15 = sadd.s32 1, %s605_s15  }
 0x1f4   : > { %p11_p4 = scmp.ge.s32.totalorder %s14_s15, 4  }
 0x1f6   :  { %13 = sbr.rel (!%p11_p4) target bundleno = 1 (0x1), region = 66 }

// kernel: block_forward.9
= control target key start
LH: loop header
LB: loop body
LE: loop exit
PB: predicated region body
PF: predicated region fallthrough
CT: control target
= control target key end

     0   :  { %10 = vsyncpa [#allocation3], 0  ;;  %s982_s0 = inlined_call_operand.vmem [shape: f32[2,64,16], index: 0, kind: input, shape index: {}]   ;;  %s983_s1 = inlined_call_operand.vmem [shape: f32[2,64,16], index: 1, kind: input, shape index: {}]   ;;  %s984_s2 = inlined_call_operand.vmem [shape: f32[1,16], index: 2, kind: input, shape index: {}]   ;;  %s985_s3 = inlined_call_operand.vmem [shape: f32[1,16], index: 3, kind: input, shape index: {}]   ;;  %s986_s4 = inlined_call_operand.vmem [shape: f32[16,16], index: 4, kind: input, shape index: {}]   ;;  %s987_s5 = inlined_call_operand.hbm [shape: f32[2,64,16], index: 5, kind: output, shape index: {}]  }
   0x1   :  { %12 = vsyncpa [#allocation3 + $0x1], 0  ;;  %s827_s18 = smov 0   ;;  %s829_s19 = smov 0  }
   0x2   :  { %s831_s20 = smov 0   ;;  %s833_s21 = smov 0  }
   0x3 LB: > { %s848_s22 = sadd.s32 4294967295, %s790_s21   ;;  %s644_s23 = sadd.s32 4294967294, %s790_s21   ;;  %s790_s21 = sphi %s833_s21, %s993_s21   ;;  %s786_s20 = sphi %s831_s20, %s992_s20   ;;  %s782_s19 = sphi %s829_s19, %s991_s19   ;;  %s778_s18 = sphi %s827_s18, %s990_s18  }
   0x4   : > { %s852_s24 = sadd.s32 1, %s790_s21   ;;  %s140_s25 = sadd.s32 1, %s786_s20 }
   0x5   : > { %s137_s26 = ssub.s32 %s790_s21, %s852_s24  ;;  %p150_p0 = scmp.ne.s32.totalorder %s786_s20, %s782_s19 }
   0x6   : > { %p138_p1 = scmp.eq.s32.totalorder %s137_s26, 0  ;;  %p151_p2 = scmp.eq.s32.totalorder %s848_s22, 1 }
   0x7   : > { %p156_p3 = scmp.ne.s32.totalorder %s782_s19, %s778_s18  ;;  %p157_p4 = scmp.eq.s32.totalorder %s644_s23, 1 }
   0x8   : > { %s863_s27 = scalar_select %p138_p1, %s786_s20, %s140_s25  }
   0x9   : > { %p865_p5 = por %p151_p2, %p150_p0  ;;  %p869_p6 = por %p157_p4, %p156_p3 }
   0xa   : > { %p647_p7 = scmp.ge.s32.totalorder %s790_s21, 1  ;;  %p200_p8 = scmp.lt.s32.totalorder %s790_s21, 3 }
   0xc   : > { %p201_p9 = pnand %p647_p7, %p200_p8 }
   0xd   : > { %p233_p10 = scmp.lt.s32.totalorder (!%p201_p9), %s848_s22, 1  ;;  %s230_s17 = sand.u32 (!%p201_p9), 1, %s782_s19  }
   0xe   : > { %204 = sbr.rel (%p201_p9) target bundleno = 525 (0x20d), region = 40  ;;  %s648_s26 = sshll.u32 (!%p201_p9), %s230_s17, 6 }
   0xf   : > { %s664_s7 = sshll.u32 (!%p201_p9), %s848_s22, 10  ;;  %s232_s8 = scalar_lea.vmem (!%p201_p9), [#allocation2], %s648_s26 }
  0x10   : > { %s922_s11 = scalar_lea.hbm (!%p201_p9), %s987_s5, %s664_s7  ;;  %s942_s12 = scalar_lea.sflag (!%p201_p9), [#allocation3], %s230_s17 }
  0x11   : > { %s794_s14 = smov (!%p201_p9), [#allocation2]  }
  0x12   : > { %s734_s15 = sshll.u32 (!%p201_p9), %s794_s14, 4  ;;  %s735_s15 = int_to_ptr.vmem [resolvable:$false] %s734_s15 }
  0x13   : > { %v270_v0 = vld [vmem:[%s986_s4 + $0x8] sm:$0xff]  ;;  %v792_v1 = vmov 0.0   ;;  %v269_v2 = vld [vmem:[%s986_s4] sm:$0xff]  ;;  %vm793_vm0 = vmmov 0   ;;  %s234_s9 = scalar_select %p233_p10, %s848_s22, 1  ;;  %vm271_vm1 = vcmask 130048   ;;  %v367_v48 = vlaneseq }
  0x14   : > { %671 = vmatprep.subr.mxu0 %v792_v1  ;;  %675 = vmatprep.mubr.msk.f32.mxu0 %vm793_vm0, %v792_v1 }
  0x15   : > { %672 = vmatpush3.msra.mxu0 %v270_v0  ;;  %678 = vmatprep.subr.mxu1 %v792_v1  ;;  %s662_s10 = sshll.u32 %s234_s9, 6  ;;  %v368_v49 = vshrl.u32 %v367_v48, 7  ;;  %s570_s9 = sshll.u32 %s232_s8, 4  ;;  %s924_s9 = int_to_ptr.vmem [resolvable:$true] %s570_s9 }
  0x16   : > { %673 = vmatprep.subr.mxu0 %v792_v1  ;;  %679 = vmatpush3.msra.mxu1 %v270_v0  ;;  %s237_s13 = scalar_lea.vmem %s982_s0, %s662_s10  ;;  %s242_s16 = scalar_lea.vmem %s983_s1, %s662_s10 }
  0x17   : > { %674 = vmatpush3.msra.mxu0 %v269_v2  ;;  %680 = vmatprep.subr.mxu1 %v792_v1  ;;  %v243_v3 = vld [vmem:[%s237_s13] sm:$0xff]  ;;  %v244_v4 = vld [vmem:[%s237_s13 + $0x8] sm:$0xff]  ;;  %v245_v5 = vld [vmem:[%s237_s13 + $0x10] sm:$0xff]  ;;  %v369_v50 = vsub.s32 0, %v368_v49  ;;  %p737_p0 = scmp.lt.s32.totalorder %s924_s9, %s735_s15 }
  0x18   : > { %681 = vmatpush3.msra.mxu1 %v269_v2  ;;  %682 = vmatprep.mubr.msk.f32.mxu1 %vm793_vm0, %v792_v1  ;;  %v246_v6 = vld [vmem:[%s237_s13 + $0x18] sm:$0xff]  ;;  %v247_v7 = vld [vmem:[%s237_s13 + $0x20] sm:$0xff]  ;;  %v252_v9 = vld [vmem:[%s242_s16 + $0x8] sm:$0xff] }
  0x19   : > { %v251_v8 = vld [vmem:[%s242_s16] sm:$0xff]  ;;  %v253_v10 = vld [vmem:[%s242_s16 + $0x10] sm:$0xff]  ;;  %v254_v11 = vld [vmem:[%s242_s16 + $0x18] sm:$0xff]  ;;  %v260_v14 = vadd.f32 %v252_v9, %v244_v4 }
  0x1a   : > { %v259_v12 = vadd.f32 %v251_v8, %v243_v3  ;;  %v255_v13 = vld [vmem:[%s242_s16 + $0x20] sm:$0xff]  ;;  %v261_v15 = vadd.f32 %v253_v10, %v245_v5  ;;  %v262_v16 = vadd.f32 %v254_v11, %v246_v6  ;;  %v248_v17 = vld [vmem:[%s237_s13 + $0x28] sm:$0xff]  ;;  %v249_v23 = vld [vmem:[%s237_s13 + $0x30] sm:$0xff] }
  0x1b   : > { %v256_v18 = vld [vmem:[%s242_s16 + $0x28] sm:$0xff]  ;;  %v263_v20 = vadd.f32 %v255_v13, %v247_v7  ;;  %v273_v21 = vsel %vm271_vm1, %v260_v14, 0.0  ;;  %v257_v24 = vld [vmem:[%s242_s16 + $0x30] sm:$0xff]  ;;  %v250_v28 = vld [vmem:[%s237_s13 + $0x38] sm:$0xff]  ;;  %s730_s13 = scalar_lea.vmem %s924_s9, 1024 }
  0x1c   : > { %v272_v19 = vsel %vm271_vm1, %v259_v12, 0.0  ;;  %v275_v22 = vsel %vm271_vm1, %v261_v15, 0.0  ;;  %v264_v26 = vadd.f32 %v256_v18, %v248_v17  ;;  %v277_v27 = vsel %vm271_vm1, %v262_v16, 0.0  ;;  %v258_v29 = vld [vmem:[%s242_s16 + $0x38] sm:$0xff]  ;;  %p731_p11 = scmp.ne.s32.totalorder %s924_s9, %s730_s13  ;;  %s736_s16 = scalar_lea.vmem %s735_s15, 2048 }
  0x1d   : > { %v274_v25 = vadd.f32 %v273_v21, %v272_v19  ;;  %v265_v31 = vadd.f32 %v257_v24, %v249_v23  ;;  %v279_v32 = vsel %vm271_vm1, %v263_v20, 0.0  ;;  %v266_v34 = vadd.f32 %v258_v29, %v250_v28  ;;  %p738_p1 = scmp.lt.s32.totalorder %s736_s16, %s730_s13 }
  0x1e   : > { %v281_v35 = vsel %vm271_vm1, %v264_v26, 0.0  ;;  %p732_p12 = pnand %p731_p11, %p865_p5 }
  0x1f   : > { %v276_v30 = vadd.f32 %v275_v22, %v274_v25  ;;  %v283_v37 = vsel %vm271_vm1, %v265_v31, 0.0  ;;  %v285_v39 = vsel %vm271_vm1, %v266_v34, 0.0  ;;  %p739_p2 = por %p738_p1, %p737_p0 }
  0x20   : > { %p733_p13 = pneg %p732_p12 }
  0x21   : > { %v278_v33 = vadd.f32 %v277_v27, %v276_v30 }
  0x22   : > { %p740_p3 = pnand %p739_p2, %p733_p13 }
  0x23   : > { %v280_v36 = vadd.f32 %v279_v32, %v278_v33 }
  0x25   : > { %v282_v38 = vadd.f32 %v281_v35, %v280_v36 }
  0x27   : > { %v284_v40 = vadd.f32 %v283_v37, %v282_v38 }
  0x29   : > { %v286_v41 = vadd.f32 %v285_v39, %v284_v40 }
  0x2b   : > { %v287_v42 = vrot.slane %v286_v41, 4 }
  0x2d   : > { %v288_v43 = vadd.f32 %v287_v42, %v286_v41 }
  0x2f   : > { %v289_v44 = vrot.slane %v288_v43, 2 }
  0x31   : > { %v290_v45 = vadd.f32 %v289_v44, %v288_v43  ;;  %v656_v43 = vld [vmem:[%s985_s3] ss:$0 sm:$0xff] }
  0x33   : > { %v291_v46 = vrot.slane %v290_v45, 1 }
  0x35   : > { %v292_v47 = vadd.f32 %v291_v46, %v290_v45 }
  0x37   : > { %676 = vmatmul.mubr.msk.f32.vlgmr.msra.gmra.mxu0 %vm271_vm1, %v292_v47 }
  0xf7   : > { %v362_v51 = vpop.f32.mrf.mxu0 }
  0xf8   : > { %v366_v52 = vmul.f32 0.00390625, %v362_v51 }
  0xf9   : > { %v677_v53 = vpop.f32.mrf.mxu0 }
  0xfa   : > { %v370_v54 = vrot.slane %v366_v52, %v369_v50 }
  0xfc   : > { %v371_v55 = vsub.f32 %v259_v12, %v370_v54  ;;  %v372_v56 = vsub.f32 %v260_v14, %v370_v54  ;;  %v373_v57 = vsub.f32 %v261_v15, %v370_v54  ;;  %v374_v58 = vsub.f32 %v262_v16, %v370_v54 }
  0xfd   : > { %v375_v59 = vsub.f32 %v263_v20, %v370_v54  ;;  %v376_v63 = vsub.f32 %v264_v26, %v370_v54  ;;  %v377_v4 = vsub.f32 %v265_v31, %v370_v54  ;;  %v378_v8 = vsub.f32 %v266_v34, %v370_v54  ;;  %v655_v34 = vld [vmem:[%s984_s2] ss:$0 sm:$0xff] }
  0xfe   : > { %v379_v60 = vmul.f32 %v371_v55, %v371_v55  ;;  %v380_v61 = vmul.f32 %v372_v56, %v372_v56  ;;  %v381_v62 = vmul.f32 %v373_v57, %v373_v57  ;;  %v382_v0 = vmul.f32 %v374_v58, %v374_v58 }
  0xff   : > { %v383_v5 = vmul.f32 %v375_v59, %v375_v59  ;;  %v384_v9 = vmul.f32 %v376_v63, %v376_v63  ;;  %v385_v12 = vmul.f32 %v377_v4, %v377_v4  ;;  %v386_v15 = vmul.f32 %v378_v8, %v378_v8 }
 0x100   : > { %v387_v1 = vsel %vm271_vm1, %v379_v60, 0.0  ;;  %v388_v2 = vsel %vm271_vm1, %v380_v61, 0.0  ;;  %v390_v6 = vsel %vm271_vm1, %v381_v62, 0.0  ;;  %v392_v10 = vsel %vm271_vm1, %v382_v0, 0.0 }
 0x101   : > { %v389_v3 = vadd.f32 %v388_v2, %v387_v1  ;;  %v394_v13 = vsel %vm271_vm1, %v383_v5, 0.0  ;;  %v396_v16 = vsel %vm271_vm1, %v384_v9, 0.0  ;;  %v398_v18 = vsel %vm271_vm1, %v385_v12, 0.0 }
 0x102   : > { %v400_v20 = vsel %vm271_vm1, %v386_v15, 0.0 }
 0x103   : > { %v391_v7 = vadd.f32 %v390_v6, %v389_v3 }
 0x105   : > { %v393_v11 = vadd.f32 %v392_v10, %v391_v7 }
 0x107   : > { %v395_v14 = vadd.f32 %v394_v13, %v393_v11 }
 0x109   : > { %v397_v17 = vadd.f32 %v396_v16, %v395_v14 }
 0x10b   : > { %v399_v19 = vadd.f32 %v398_v18, %v397_v17 }
 0x10d   : > { %v401_v21 = vadd.f32 %v400_v20, %v399_v19 }
 0x10f   : > { %v402_v22 = vrot.slane %v401_v21, 4 }
 0x111   : > { %v403_v23 = vadd.f32 %v402_v22, %v401_v21 }
 0x113   : > { %v404_v24 = vrot.slane %v403_v23, 2 }
 0x115   : > { %v405_v25 = vadd.f32 %v404_v24, %v403_v23 }
 0x117   : > { %v406_v26 = vrot.slane %v405_v25, 1 }
 0x119   : > { %v407_v27 = vadd.f32 %v406_v26, %v405_v25 }
 0x11b   : > { %683 = vmatmul.mubr.msk.f32.vlgmr.msra.gmra.mxu1 %vm271_vm1, %v407_v27 }
 0x1db   : > { %v477_v28 = vpop.f32.mrf.mxu1 }
 0x1dc   : > { %v481_v29 = vmul.f32 0.00390625, %v477_v28 }
 0x1dd   : > { %v684_v30 = vpop.f32.mrf.mxu1 }
 0x1de   : > { %v482_v31 = vadd.f32 1e-05, %v481_v29 }
 0x1e0   : > { %728 = vrsqrt.f32 %v482_v31 }
 0x1ed   : > { %v729_v32 = vpop.eup %728 }
 0x1ee   : > { %v487_v33 = vrot.slane %v729_v32, %v369_v50 }
 0x1f0   : > { %v488_v35 = vmul.f32 %v487_v33, %v371_v55  ;;  %v489_v36 = vmul.f32 %v487_v33, %v372_v56  ;;  %v490_v37 = vmul.f32 %v487_v33, %v373_v57  ;;  %v491_v38 = vmul.f32 %v487_v33, %v374_v58 }
 0x1f1   : > { %v492_v39 = vmul.f32 %v487_v33, %v375_v59  ;;  %v493_v40 = vmul.f32 %v487_v33, %v376_v63  ;;  %v494_v41 = vmul.f32 %v487_v33, %v377_v4  ;;  %v495_v42 = vmul.f32 %v487_v33, %v378_v8 }
 0x1f2   : > { %v502_v44 = vmul.f32 %v655_v34, %v488_v35  ;;  %v503_v45 = vmul.f32 %v655_v34, %v489_v36  ;;  %v504_v46 = vmul.f32 %v655_v34, %v490_v37  ;;  %v505_v47 = vmul.f32 %v655_v34, %v491_v38 }
 0x1f3   : > { %v506_v48 = vmul.f32 %v655_v34, %v492_v39  ;;  %v507_v49 = vmul.f32 %v655_v34, %v493_v40  ;;  %v508_v50 = vmul.f32 %v655_v34, %v494_v41  ;;  %v509_v51 = vmul.f32 %v655_v34, %v495_v42 }
 0x1f4   : > { %v516_v52 = vadd.f32 %v656_v43, %v502_v44  ;;  %v517_v53 = vadd.f32 %v656_v43, %v503_v45  ;;  %v518_v54 = vadd.f32 %v656_v43, %v504_v46  ;;  %v519_v55 = vadd.f32 %v656_v43, %v505_v47 }
 0x1f5   : > { %v520_v56 = vadd.f32 %v656_v43, %v506_v48  ;;  %v521_v57 = vadd.f32 %v656_v43, %v507_v49  ;;  %v522_v58 = vadd.f32 %v656_v43, %v508_v50  ;;  %v523_v59 = vadd.f32 %v656_v43, %v509_v51 }
 0x1f6   : > { %vm524_vm2 = vcmp.gt.f32.partialorder %v516_v52, 0.0  ;;  %vm525_vm3 = vcmp.gt.f32.partialorder %v517_v53, 0.0  ;;  %vm526_vm4 = vcmp.gt.f32.partialorder %v518_v54, 0.0  ;;  %vm527_vm5 = vcmp.gt.f32.partialorder %v519_v55, 0.0 }
 0x1f7   : > { %vm528_vm6 = vcmp.gt.f32.partialorder %v520_v56, 0.0  ;;  %vm529_vm7 = vcmp.gt.f32.partialorder %v521_v57, 0.0  ;;  %vm530_vm8 = vcmp.gt.f32.partialorder %v522_v58, 0.0  ;;  %vm531_vm9 = vcmp.gt.f32.partialorder %v523_v59, 0.0 }
 0x1f8   : > { %v532_v60 = vmul.f32 0.01, %v516_v52  ;;  %v533_v61 = vmul.f32 0.01, %v517_v53  ;;  %v534_v62 = vmul.f32 0.01, %v518_v54 }
 0x1f9   : > { %v535_v63 = vmul.f32 0.01, %v519_v55  ;;  %v536_v0 = vmul.f32 0.01, %v520_v56  ;;  %v537_v1 = vmul.f32 0.01, %v521_v57 }
 0x1fa   : > { %v538_v2 = vmul.f32 0.01, %v522_v58  ;;  %v539_v3 = vmul.f32 0.01, %v523_v59  ;;  %v540_v4 = vsel %vm524_vm2, %v516_v52, %v532_v60  ;;  %v541_v5 = vsel %vm525_vm3, %v517_v53, %v533_v61 }
 0x1fb   : > { %v542_v6 = vsel %vm526_vm4, %v518_v54, %v534_v62  ;;  %v543_v7 = vsel %vm527_vm5, %v519_v55, %v535_v63  ;;  %v544_v8 = vsel %vm528_vm6, %v520_v56, %v536_v0  ;;  %v545_v9 = vsel %vm529_vm7, %v521_v57, %v537_v1  ;;  %548 = vst.msk [vmem:[%s232_s8] sm:$0xff] %vm271_vm1, %v540_v4 }
 0x1fc   : > { %549 = vst.msk [vmem:[%s232_s8 + $0x8] sm:$0xff] %vm271_vm1, %v541_v5  ;;  %v546_v10 = vsel %vm530_vm8, %v522_v58, %v538_v2  ;;  %v547_v11 = vsel %vm531_vm9, %v523_v59, %v539_v3  ;;  %550 = vst.msk [vmem:[%s232_s8 + $0x10] sm:$0xff] %vm271_vm1, %v542_v6 }
 0x1fd   : > { %551 = vst.msk [vmem:[%s232_s8 + $0x18] sm:$0xff] %vm271_vm1, %v543_v7  ;;  %552 = vst.msk [vmem:[%s232_s8 + $0x20] sm:$0xff] %vm271_vm1, %v544_v8 }
 0x1fe   : > { %553 = vst.msk [vmem:[%s232_s8 + $0x28] sm:$0xff] %vm271_vm1, %v545_v9  ;;  %554 = vst.msk [vmem:[%s232_s8 + $0x30] sm:$0xff] %vm271_vm1, %v546_v10 }
 0x1ff   : > { %555 = vst.msk [vmem:[%s232_s8 + $0x38] sm:$0xff] %vm271_vm1, %v547_v11 }
 0x200   : > { %743 = shalt.err (!%p740_p3)
}
 0x201   : > { %s744_s17 = scalar_lea.hbm %s922_s11, 1024  ;;  %s748_s26 = scalar_lea.hbm %s987_s5, 2048 }
 0x202   : > { %p745_p4 = scmp.ne.s32.totalorder %s922_s11, %s744_s17  ;;  %p749_p9 = scmp.lt.s32.totalorder %s922_s11, %s987_s5 }
 0x203   : > { %p750_p10 = scmp.lt.s32.totalorder %s748_s26, %s744_s17 }
 0x204   : > { %p746_p7 = pnand %p745_p4, %p865_p5 }
 0x205   : > { %p751_p11 = por %p750_p10, %p749_p9 }
 0x206   : > { %p747_p8 = pneg %p746_p7 }
 0x208   : > { %p752_p12 = pnand %p751_p11, %p747_p8 }
 0x20a   : > { %755 = shalt.err (!%p752_p12)
}
 0x20b   : > { %s795_s7 = smov 128   ;;  %s796_s8 = smov 8  }
 0x20c   : > { %685 = dma.vmem_to_hbm [thread:$0]  (%p865_p5), %s924_s9, 1024, %s922_s11, %s942_s12, %s795_s7, %s795_s7, %s796_s8  }
 0x20d PF: > { %p691_p13 = scmp.ge.s32.totalorder %s790_s21, 2  ;;  %s585_s10 = sand.u32 1, %s778_s18  }
 0x20e   : > { %s586_s22 = scalar_lea.sflag [#allocation3], %s585_s10 }
 0x20f   : > { %p688_p0 = pnand %p691_p13, %p869_p6 }
 0x211   : > { %p689_p1 = pneg %p688_p0 }
 0x213   : > { %773 = dma.done.wait (%p689_p1), %s586_s22, 1024  }
 0x214   : > { %775 = vsyncadd (%p689_p1), %s586_s22, 4294966272  ;;  %p15_p2 = scmp.ge.s32.totalorder %s852_s24, 4   ;;  %s990_s18 = smov %s782_s19 }
 0x215   : > { %s991_s19 = smov %s786_s20  ;;  %s992_s20 = smov %s863_s27 }
 0x216   : > { %s993_s21 = smov %s852_s24  ;;  %17 = sbr.rel (!%p15_p2) target bundleno = 3 (0x3), region = 78 }
 0x21b   :  { %591 = vsyncpa [#allocation3], 1 }
 0x21c   :  { %593 = vsyncpa [#allocation3 + $0x1], 1 }

</bundles_post_ra>
